<compile_context>
chip_gen: v5e
topology: v5e:2x2
jax: 0.10.0
libtpu: 0.0.40
codegen_flags: <defaults>
</compile_context>

<pallas_src>
import jax
import jax.numpy as jnp
from jax.experimental import pallas as pl
from jax.experimental.pallas import tpu as pltpu


# ------------------------------------------------------------------
# Generation-aware tiling defaults
# ------------------------------------------------------------------
_TILING_CACHE = None


def _tiling():
    """Returns (tn, vmem_limit_bytes) tuned per TPU generation (cached)."""
    global _TILING_CACHE
    if _TILING_CACHE is None:
        try:
            kind = jax.devices()[0].device_kind.lower()
        except Exception:  # pragma: no cover - no device info available
            kind = ""
        if ("v5" in kind or "v6" in kind) and "v7" not in kind:
            # 128 MiB physical VMEM, single TC: fatter tiles, fewer grid steps.
            _TILING_CACHE = (2048, 64 * 1024 * 1024)
        else:
            # v7x (64 MiB physical VMEM, 2 TCs on the parallel axis) / unknown:
            # cap the double-buffered weight footprint at 16 MiB.
            _TILING_CACHE = (1024, 32 * 1024 * 1024)
    return _TILING_CACHE


# ------------------------------------------------------------------
# Kernel bodies
# ------------------------------------------------------------------
def _linear_relu_fullk_kernel(x_ref, w_ref, b_ref, o_ref):
    # Whole-K path: grid = (N // tn,); one matmul per grid step, no accumulator.
    # x_ref: (B, K) resident across the grid; w_ref: (K, tn) contiguous slab.
    acc = jnp.dot(x_ref[...], w_ref[...], preferred_element_type=jnp.float32)
    o_ref[...] = jnp.maximum(acc + b_ref[...], 0.0).astype(o_ref.dtype)


def _make_ktiled_kernel(tk):
    # Fallback path (very large K): grid = (N // tn, K // tk), reduction axis last.
    # x stays fully resident; only the weight slab is streamed per k step.
    def kernel(x_ref, w_ref, b_ref, o_ref, acc_ref):
        k = pl.program_id(1)

        @pl.when(k == 0)
        def _():
            acc_ref[...] = jnp.zeros_like(acc_ref)

        start = pl.multiple_of(k * tk, tk)
        acc_ref[...] += jnp.dot(
            x_ref[:, pl.ds(start, tk)], w_ref[...],
            preferred_element_type=jnp.float32,
        )

        @pl.when(k == pl.num_programs(1) - 1)
        def _():
            o_ref[...] = jnp.maximum(acc_ref[...] + b_ref[...], 0.0).astype(o_ref.dtype)

    return kernel


# ------------------------------------------------------------------
# Tiling helpers
# ------------------------------------------------------------------
def _choose_tk(K, tn, itemsize, budget_bytes):
    """K-tile size: whole K if the (K, tn) slab fits the per-buffer budget, else the
    largest 512-multiple (then 128-multiple) divisor of K that fits.  Never returns an
    awkward divisor that would break the (8,128) block constraint."""
    max_tk = max(128, budget_bytes // (tn * itemsize))
    if K <= max_tk:
        return K
    for step in (512, 128):
        best = 0
        m = step
        while m <= max_tk:
            if K % m == 0:
                best = m
            m += step
        if best:
            return best
    # No tile-friendly divisor: fall back to whole-K (may exceed the nominal budget).
    return K


def pack_weight(w, tn):
    """One-time repack (K, N) -> (N//tn, K, tn): each output tile's weights become a
    single contiguous HBM slab, so the per-grid-step DMA is one long burst."""
    K, N = w.shape
    assert N % tn == 0, (N, tn)
    return jnp.transpose(w.reshape(K, N // tn, tn), (1, 0, 2))


def unpack_weight(w_packed):
    """(N//tn, K, tn) -> (K, N); used only for the pure-JAX reference."""
    NT, K, tn = w_packed.shape
    return jnp.transpose(w_packed, (1, 0, 2)).reshape(K, NT * tn)


# ------------------------------------------------------------------
# Linear + ReLU wrapper
# ------------------------------------------------------------------
def linear_relu(x, w_packed, b, *, out_dtype=jnp.float32, vmem_limit_bytes=None):
    """y = relu(x @ W + b).  x:(B,K) bf16, w_packed:(N//tn, K, tn) bf16, b:(1,N) f32."""
    B, K = x.shape
    NT, Kw, tn = w_packed.shape
    assert K == Kw, (K, Kw)
    N = NT * tn
    assert b.shape == (1, N), (b.shape, N)

    if vmem_limit_bytes is None:
        vmem_limit_bytes = _tiling()[1]

    itemsize = jnp.dtype(w_packed.dtype).itemsize
    # Per-buffer weight budget: the double-buffered weight slabs dominate VMEM; leave
    # ~4 MiB of slack for the resident x block, bias, and output tiles.
    budget = max(1 << 20, (vmem_limit_bytes - (4 << 20)) // 2)
    tk = _choose_tk(K, tn, itemsize, budget)

    if tk == K:
        # Whole-reduction path: 1-D grid over N only, no accumulator scratch.
        return pl.pallas_call(
            _linear_relu_fullk_kernel,
            out_shape=jax.ShapeDtypeStruct((B, N), out_dtype),
            grid=(NT,),
            in_specs=[
                pl.BlockSpec((B, K), lambda j: (0, 0)),           # resident activations
                pl.BlockSpec((None, K, tn), lambda j: (j, 0, 0)),  # contiguous weight slab
                pl.BlockSpec((1, tn), lambda j: (0, j)),
            ],
            out_specs=pl.BlockSpec((B, tn), lambda j: (0, j)),
            compiler_params=pltpu.CompilerParams(
                dimension_semantics=("parallel",),
                vmem_limit_bytes=vmem_limit_bytes,
            ),
        )(x, w_packed, b)

    # K-tiled fallback (very large K): accumulator scratch, reduction axis last,
    # activations kept fully resident (sliced in-kernel).
    assert K % tk == 0 and tk % 128 == 0
    return pl.pallas_call(
        _make_ktiled_kernel(tk),
        out_shape=jax.ShapeDtypeStruct((B, N), out_dtype),
        grid=(NT, K // tk),
        in_specs=[
            pl.BlockSpec((B, K), lambda j, k: (0, 0)),             # resident activations
            pl.BlockSpec((None, tk, tn), lambda j, k: (j, k, 0)),  # contiguous weight block
            pl.BlockSpec((1, tn), lambda j, k: (0, j)),
        ],
        out_specs=pl.BlockSpec((B, tn), lambda j, k: (0, j)),
        scratch_shapes=[pltpu.VMEM((B, tn), jnp.float32)],
        compiler_params=pltpu.CompilerParams(
            dimension_semantics=("parallel", "arbitrary"),
            vmem_limit_bytes=vmem_limit_bytes,
        ),
    )(x, w_packed, b)


# ------------------------------------------------------------------
# Parameters (match VGGClassifier._initialize_weights)
# ------------------------------------------------------------------
def init_vgg_classifier_params(key, in_channel, tn=None):
    """Linear weights ~ N(0, 0.01), biases = 0.  Weights are stored transposed
    ((in, out) vs torch's (out, in)), cast ONCE to bf16 (halves the HBM stream), and
    repacked into tile-contiguous (N//tn, K, tn) layout.  Biases stay f32."""
    if tn is None:
        tn = _tiling()[0]
    N = 4096
    while N % tn:
        tn //= 2

    d0 = in_channel * 7 * 7
    k1, k2 = jax.random.split(key)
    w1 = (jax.random.normal(k1, (d0, N), dtype=jnp.float32) * 0.01).astype(jnp.bfloat16)
    w2 = (jax.random.normal(k2, (N, N), dtype=jnp.float32) * 0.01).astype(jnp.bfloat16)
    return {
        "w1": pack_weight(w1, tn),
        "b1": jnp.zeros((1, N), dtype=jnp.float32),
        "w2": pack_weight(w2, tn),
        "b2": jnp.zeros((1, N), dtype=jnp.float32),
    }


def vgg_classifier_forward(params, x):
    """x: (B, C, 7, 7) NCHW -> (B, 4096) f32."""
    B = x.shape[0]
    xf = x.reshape(B, -1).astype(jnp.bfloat16)          # x.view(x.size(0), -1)
    # Linear + ReLU (+ Dropout=identity); keep h in bf16 to halve its bytes.
    h = linear_relu(xf, params["w1"], params["b1"], out_dtype=jnp.bfloat16)
    # Linear + ReLU (+ Dropout=identity); final output in f32.
    y = linear_relu(h, params["w2"], params["b2"], out_dtype=jnp.float32)
    return y


if __name__ == "__main__":
    key = jax.random.PRNGKey(0)
    k_x, k_p = jax.random.split(key)

    in_channel = 4          # small synthetic channel count (module default is 512)
    B = 2
    x = jax.random.normal(k_x, (B, in_channel, 7, 7), dtype=jnp.float32)

    params = init_vgg_classifier_params(k_p, in_channel)

    out = vgg_classifier_forward(params, x)
    out = jax.block_until_ready(out)

    # Pure-JAX reference with identical bf16 numerics (f32 accumulation).
    w1 = unpack_weight(params["w1"])
    w2 = unpack_weight(params["w2"])
    xf = x.reshape(B, -1).astype(jnp.bfloat16)
    h_ref = jnp.maximum(
        jnp.dot(xf, w1, preferred_element_type=jnp.float32) + params["b1"], 0.0
    ).astype(jnp.bfloat16)
    ref = jnp.maximum(
        jnp.dot(h_ref, w2, preferred_element_type=jnp.float32) + params["b2"], 0.0
    )

    assert out.shape == (B, 4096)
    assert out.dtype == jnp.float32
    assert jnp.allclose(out, ref, atol=1e-2, rtol=1e-2)

    print("KERNEL_OK")
</pallas_src>

<mosaic_0001>
module attributes {stable_mosaic.version = 11 : i64} {
  func.func @_linear_relu_fullk_kernel(%arg0: i32, %arg1: memref<2x196xbf16, #tpu.memory_space<vmem>>, %arg2: memref<1x196x1024xbf16, #tpu.memory_space<vmem>>, %arg3: memref<1x1024xf32, #tpu.memory_space<vmem>>, %arg4: memref<2x1024xbf16, #tpu.memory_space<vmem>>) attributes {dimension_semantics = [#tpu.dimension_semantics<parallel>], iteration_bounds = array<i64: 4>, scalar_prefetch = 0 : i64, scratch_operands = 0 : i64, tpu.core_type = #tpu.core_type<tc>, window_params = [{pipeline_mode = #tpu.pipeline_mode<synchronous>, transform_indices = @transform_0, window_bounds = array<i64: 2, 196>}, {transform_indices = @transform_1, window_bounds = array<i64: 1, 196, 1024>}, {transform_indices = @transform_2, window_bounds = array<i64: 1, 1024>}, {transform_indices = @transform_3, window_bounds = array<i64: 2, 1024>}]} {
    %c0 = arith.constant 0 : index
    %c0_0 = arith.constant 0 : index
    %0 = vector.load %arg1[%c0, %c0_0] : memref<2x196xbf16, #tpu.memory_space<vmem>>, vector<2x196xbf16>
    %c0_1 = arith.constant 0 : index
    %c0_2 = arith.constant 0 : index
    %c0_3 = arith.constant 0 : index
    %1 = vector.load %arg2[%c0_1, %c0_2, %c0_3] : memref<1x196x1024xbf16, #tpu.memory_space<vmem>>, vector<1x196x1024xbf16>
    %2 = vector.shape_cast %1 : vector<1x196x1024xbf16> to vector<196x1024xbf16>
    %cst = arith.constant dense<0.000000e+00> : vector<2x1024xf32>
    %3 = tpu.matmul %0, %2, %cst {dimension_numbers = #tpu.dot_dimension_numbers<[1], [0], [0], [1], [0, 0, 1, 1], [], []>} : vector<2x196xbf16>, vector<196x1024xbf16>, vector<2x1024xf32> -> vector<2x1024xf32>
    %c0_4 = arith.constant 0 : index
    %c0_5 = arith.constant 0 : index
    %4 = vector.load %arg3[%c0_4, %c0_5] : memref<1x1024xf32, #tpu.memory_space<vmem>>, vector<1x1024xf32>
    %5 = vector.broadcast %4 : vector<1x1024xf32> to vector<2x1024xf32>
    %6 = arith.addf %3, %5 : vector<2x1024xf32>
    %cst_6 = arith.constant 0.000000e+00 : f32
    %7 = vector.broadcast %cst_6 : f32 to vector<2x1024xf32>
    %8 = arith.maximumf %6, %7 : vector<2x1024xf32>
    %9 = arith.truncf %8 : vector<2x1024xf32> to vector<2x1024xbf16>
    %c0_7 = arith.constant 0 : index
    %c0_8 = arith.constant 0 : index
    %10 = vector.load %arg4[%c0_7, %c0_8] : memref<2x1024xbf16, #tpu.memory_space<vmem>>, vector<2x1024xbf16>
    tpu.vector_store %arg4[%c0_7, %c0_8], %9 {strides = array<i32>} : memref<2x1024xbf16, #tpu.memory_space<vmem>>, vector<2x1024xbf16>,
    return
  }
  func.func @transform_0(%arg0: i32) -> (i32, i32) {
    %c0_i32 = arith.constant 0 : i32
    %c0_i32_0 = arith.constant 0 : i32
    %c0_i32_1 = arith.constant 0 : i32
    return %c0_i32, %c0_i32_0 : i32, i32
  }
  func.func @transform_1(%arg0: i32) -> (i32, i32, i32) {
    %c0_i32 = arith.constant 0 : i32
    %c0_i32_0 = arith.constant 0 : i32
    %c0_i32_1 = arith.constant 0 : i32
    return %arg0, %c0_i32, %c0_i32_0 : i32, i32, i32
  }
  func.func @transform_2(%arg0: i32) -> (i32, i32) {
    %c0_i32 = arith.constant 0 : i32
    %c0_i32_0 = arith.constant 0 : i32
    return %c0_i32, %arg0 : i32, i32
  }
  func.func @transform_3(%arg0: i32) -> (i32, i32) {
    %c0_i32 = arith.constant 0 : i32
    %c0_i32_0 = arith.constant 0 : i32
    return %c0_i32, %arg0 : i32, i32
  }
}

</mosaic_0001>

<bundles_post_ra>
// kernel: tpu_custom_call.1
= control target key start
LH: loop header
LB: loop body
LE: loop exit
PB: predicated region body
PF: predicated region fallthrough
CT: control target
= control target key end

     0   :  { %8 = vsyncpa [#allocation3], 0  ;;  %s2160_s0 = inlined_call_operand.vmem [shape: bf16[2,196], index: 0, kind: input, shape index: {}]   ;;  %s2161_s1 = inlined_call_operand.vmem [shape: bf16[4,196,1024], index: 1, kind: input, shape index: {}]   ;;  %s2162_s2 = inlined_call_operand.vmem [shape: f32[1,4096], index: 2, kind: input, shape index: {}]   ;;  %s2163_s3 = inlined_call_operand.hbm [shape: bf16[2,4096], index: 3, kind: output, shape index: {}]  }
   0x1   :  { %10 = vsyncpa [#allocation3 + $0x1], 0  ;;  %s1803_s12 = smov 0   ;;  %s1805_s13 = smov 0  }
   0x2   :  { %s1807_s14 = smov 0   ;;  %s1809_s15 = smov 0  }
   0x3 LB: > { %s1824_s16 = sadd.s32 4294967295, %s1781_s15   ;;  %s1180_s17 = sadd.s32 4294967294, %s1781_s15   ;;  %s1781_s15 = sphi %s1809_s15, %s2169_s15   ;;  %s1777_s14 = sphi %s1807_s14, %s2168_s14   ;;  %s1773_s13 = sphi %s1805_s13, %s2167_s13   ;;  %s1769_s12 = sphi %s1803_s12, %s2166_s12  }
   0x4   : > { %s1828_s18 = sadd.s32 1, %s1781_s15   ;;  %s96_s19 = sadd.s32 1, %s1777_s14 }
   0x5   : > { %s93_s20 = ssub.s32 %s1781_s15, %s1828_s18  ;;  %p106_p0 = scmp.ne.s32.totalorder %s1777_s14, %s1773_s13 }
   0x6   : > { %p94_p1 = scmp.eq.s32.totalorder %s93_s20, 0  ;;  %p107_p2 = scmp.eq.s32.totalorder %s1824_s16, 3 }
   0x7   : > { %p112_p3 = scmp.ne.s32.totalorder %s1773_s13, %s1769_s12  ;;  %p113_p4 = scmp.eq.s32.totalorder %s1180_s17, 3 }
   0x8   : > { %s1839_s21 = scalar_select %p94_p1, %s1777_s14, %s96_s19  }
   0x9   : > { %p1841_p5 = por %p107_p2, %p106_p0  ;;  %p1845_p6 = por %p113_p4, %p112_p3 }
   0xa   : > { %p1183_p7 = scmp.ge.s32.totalorder %s1781_s15, 1  ;;  %p150_p8 = scmp.lt.s32.totalorder %s1781_s15, 5 }
   0xc   : > { %p151_p9 = pnand %p1183_p7, %p150_p8 }
   0xd   : > { %p178_p10 = scmp.lt.s32.totalorder (!%p151_p9), %s1824_s16, 3  ;;  %s2106_s4 = sshll.u32 (!%p151_p9), %s1824_s16, 3 }
   0xe   : > { %154 = sbr.rel (%p151_p9) target bundleno = 289 (0x121), region = 32  ;;  %p184_p11 = scmp.lt.s32.totalorder (!%p151_p9), %s2106_s4, 31 }
   0xf   : > { %s175_s9 = sand.u32 (!%p151_p9), 1, %s1773_s13   ;;  %s1107_s17 = scalar_lea.hbm (!%p151_p9), %s2163_s3, %s2106_s4 }
  0x10   : > { %s1184_s10 = sshll.u32 (!%p151_p9), %s175_s9, 3  ;;  %s1111_s24 = sshll.u32 (!%p151_p9), %s1107_s17, 4  ;;  %s1112_s24 = int_to_ptr.hbm [resolvable:$true] %s1111_s24 }
  0x11   : > { %s177_s19 = scalar_lea.vmem (!%p151_p9), [#allocation2], %s1184_s10  ;;  %s1097_s25 = scalar_lea.sflag (!%p151_p9), [#allocation3], %s175_s9 }
  0x12   : > { %s1109_s20 = sshll.u32 (!%p151_p9), %s177_s19, 4  ;;  %s1110_s20 = int_to_ptr.vmem [resolvable:$true] %s1109_s20 }
  0x13   : > { %v190_v0 = vld [vmem:[%s2160_s0] sm:$0x3]  ;;  %s179_s26 = scalar_select %p178_p10, %s1824_s16, 3  ;;  %vm817_vm0 = vcmask 1041408   ;;  %vm814_vm1 = vcmask 556032   ;;  %vm1073_vm2 = vcmask 1040384  }
  0x14   : > { %310 = vst [vmem:[#allocation1] ss:$9 sm:$0xff] %v190_v0  ;;  %s185_s5 = scalar_select %p184_p11, %s2106_s4, 31  ;;  %vm1077_vm3 = vcmask 1042434   ;;  %vm1082_vm4 = vcmask 1044484   ;;  %vm1086_vm5 = vcmask 1046534  }
  0x15   : > { %s1679_s27 = smul.u32 800, %s179_s26  ;;  %vm1090_vm6 = vcmask 1045508   ;;  %vm1092_vm7 = vcmask 1043456   ;;  %s1733_s26 = sshra.s32 %s1112_s24, 4  ;;  %s1734_s26 = int_to_ptr.hbm [resolvable:$true] %s1733_s26 }
  0x16   : > { %s186_s8 = scalar_lea.vmem %s2162_s2, %s185_s5  ;;  %p1740_p1 = scmp.lt.s32.totalorder %s1734_s26, %s2163_s3 }
  0x17   : > { %s1859_s30 = scalar_lea.vmem %s2161_s1, %s1679_s27  ;;  %s1735_s27 = scalar_lea.hbm %s1734_s26, 8 }
  0x18   : > { %v1413_v1 = vld [vmem:[%s1859_s30 + $0x1c0] sm:$0xf]  ;;  %v1639_v3 = vld [vmem:[%s1859_s30 + $0x1c4] sm:$0xf]  ;;  %v1897_v52 = vld [vmem:[%s1859_s30 + $0x308] sm:$0x33]  ;;  %p1736_p12 = scmp.ne.s32.totalorder %s1734_s26, %s1735_s27 }
  0x19   : > { %v1643_v2 = vld [vmem:[%s1859_s30 + $0x1dc] sm:$0xf0]  ;;  %v1415_v5 = vld [vmem:[%s1859_s30 + $0x1e0] sm:$0xf0]  ;;  %v608_v57 = vunpack.c.l.b16 %v1897_v52 }
  0x1a   : > { %v1414_v4 = vor.u32 %v1643_v2, %v1413_v1  ;;  %v287_v6 = vld [vmem:[%s1859_s30 + $0x300] sm:$0x33]  ;;  %v1418_v8 = vor.u32 %v1639_v3, %v1415_v5  ;;  %v1421_v3 = vld [vmem:[%s1859_s30 + $0x1c8] sm:$0xf]  ;;  %p1737_p13 = pnand %p1736_p12, %p1841_p5 }
  0x1b   : > { %v1381_v7 = vld [vmem:[%s1859_s30 + $0x180] sm:$0xf]  ;;  %v607_v9 = vunpack.c.h.b16 %v287_v6  ;;  %v606_v11 = vunpack.c.l.b16 %v287_v6  ;;  %v1631_v12 = vld [vmem:[%s1859_s30 + $0x184] sm:$0xf]  ;;  %v712_v2 = vpack.c.b16 %v608_v57, %v608_v57  ;;  %v1359_v57 = vld [vmem:[%s1859_s30 + $0x168] sm:$0xf0] }
  0x1c   : > { %v1635_v10 = vld [vmem:[%s1859_s30 + $0x19c] sm:$0xf0]  ;;  %v1383_v13 = vld [vmem:[%s1859_s30 + $0x1a0] sm:$0xf0]  ;;  %842 = vmatpush.bf16.msra.mxu0 %v1414_v4  ;;  %868 = vmatpush.bf16.msra.mxu2 %v1418_v8  ;;  %v1644_v4 = vld [vmem:[%s1859_s30 + $0x1e4] sm:$0xf0]  ;;  %p1738_p0 = pneg %p1737_p13 }
  0x1d   : > { %v1382_v14 = vor.u32 %v1635_v10, %v1381_v7  ;;  %v1671_v15 = vld [vmem:[%s1859_s30 + $0x2c4] sm:$0xf]  ;;  %v711_v17 = vpack.c.b16 %v607_v9, %v607_v9  ;;  %v710_v18 = vpack.c.b16 %v606_v11, %v606_v11  ;;  %v1386_v19 = vor.u32 %v1631_v12, %v1383_v13  ;;  %v1349_v20 = vld [vmem:[%s1859_s30 + $0x140] sm:$0xf] }
  0x1e   : > { %v1543_v16 = vld [vmem:[%s1859_s30 + $0x2e0] sm:$0xf0]  ;;  %v1627_v21 = vld [vmem:[%s1859_s30 + $0x15c] sm:$0xf0]  ;;  %v1422_v12 = vor.u32 %v1644_v4, %v1421_v3  ;;  %v1616_v4 = vld [vmem:[%s1859_s30 + $0x10c] sm:$0xf] }
  0x1f   : > { %v1541_v22 = vld [vmem:[%s1859_s30 + $0x2c0] sm:$0xf]  ;;  %v1623_v24 = vld [vmem:[%s1859_s30 + $0x144] sm:$0xf]  ;;  %v822_v26 = vsel %vm817_vm0, %v711_v17, 0  ;;  %v819_v27 = vsel %vm817_vm0, %v710_v18, 0  ;;  %v1546_v28 = vor.u32 %v1671_v15, %v1543_v16  ;;  %v1350_v29 = vor.u32 %v1627_v21, %v1349_v20 }
  0x20   : > { %v1675_v23 = vld [vmem:[%s1859_s30 + $0x2dc] sm:$0xf0]  ;;  %v1351_v25 = vld [vmem:[%s1859_s30 + $0x160] sm:$0xf0]  ;;  %884 = vmatpush.bf16.msra.mxu3 %v822_v26  ;;  %843 = vmatpush.bf16.msra.mxu0 %v1382_v14  ;;  %v1549_v14 = vld [vmem:[%s1859_s30 + $0x2c8] sm:$0xf] }
  0x21   : > { %v1663_v30 = vld [vmem:[%s1859_s30 + $0x284] sm:$0xf]  ;;  %858 = vmatpush.bf16.msra.mxu1 %v819_v27  ;;  %869 = vmatpush.bf16.msra.mxu2 %v1386_v19  ;;  %v1542_v32 = vor.u32 %v1675_v23, %v1541_v22  ;;  %v1354_v33 = vor.u32 %v1623_v24, %v1351_v25  ;;  %v1317_v34 = vld [vmem:[%s1859_s30 + $0x100] sm:$0xf]  ;;  %v1676_v15 = vld [vmem:[%s1859_s30 + $0x2e4] sm:$0xf0]  ;;  %v609_v22 = vunpack.c.h.b16 %v1897_v52 }
  0x22   : > { %v1511_v31 = vld [vmem:[%s1859_s30 + $0x2a0] sm:$0xf0]  ;;  %v1619_v35 = vld [vmem:[%s1859_s30 + $0x11c] sm:$0xf0]  ;;  %v825_v16 = vsel %vm817_vm0, %v712_v2, 0  ;;  %v1920_v21 = vld [vmem:[#allocation1 + $0x9] sm:$0xff]  ;;  %v1550_v27 = vor.u32 %v1676_v15, %v1549_v14 }
  0x23   : > { %v1509_v36 = vld [vmem:[%s1859_s30 + $0x280] sm:$0xf]  ;;  %v1615_v38 = vld [vmem:[%s1859_s30 + $0x104] sm:$0xf]  ;;  %v1514_v40 = vor.u32 %v1663_v30, %v1511_v31  ;;  %v1318_v41 = vor.u32 %v1619_v35, %v1317_v34  ;;  %v1389_v17 = vld [vmem:[%s1859_s30 + $0x188] sm:$0xf] }
  0x24   : > { %v1667_v37 = vld [vmem:[%s1859_s30 + $0x29c] sm:$0xf0]  ;;  %v1319_v39 = vld [vmem:[%s1859_s30 + $0x120] sm:$0xf0]  ;;  %885 = vmatpush.bf16.msra.mxu3 %v1546_v28  ;;  %844 = vmatpush.bf16.msra.mxu0 %v1350_v29  ;;  %v1636_v18 = vld [vmem:[%s1859_s30 + $0x1a4] sm:$0xf0] }
  0x25   : > { %v1655_v42 = vld [vmem:[%s1859_s30 + $0x244] sm:$0xf]  ;;  %859 = vmatpush.bf16.msra.mxu1 %v1542_v32  ;;  %870 = vmatpush.bf16.msra.mxu2 %v1354_v33  ;;  %v1510_v44 = vor.u32 %v1667_v37, %v1509_v36  ;;  %v1322_v45 = vor.u32 %v1615_v38, %v1319_v39  ;;  %v1285_v46 = vld [vmem:[%s1859_s30 + $0xc0] sm:$0xf]  ;;  %v1390_v28 = vor.u32 %v1636_v18, %v1389_v17  ;;  %v1517_v29 = vld [vmem:[%s1859_s30 + $0x288] sm:$0xf] }
  0x26   : > { %v1479_v43 = vld [vmem:[%s1859_s30 + $0x260] sm:$0xf0]  ;;  %v1611_v47 = vld [vmem:[%s1859_s30 + $0xdc] sm:$0xf0]  ;;  %v1640_v30 = vld [vmem:[%s1859_s30 + $0x1cc] sm:$0xf]  ;;  %v713_v36 = vpack.c.b16 %v609_v22, %v609_v22 }
  0x27   : > { %v1477_v48 = vld [vmem:[%s1859_s30 + $0x240] sm:$0xf]  ;;  %v1607_v50 = vld [vmem:[%s1859_s30 + $0xc4] sm:$0xf]  ;;  %v1482_v53 = vor.u32 %v1655_v42, %v1479_v43  ;;  %v1286_v54 = vor.u32 %v1611_v47, %v1285_v46  ;;  %v1423_v31 = vld [vmem:[%s1859_s30 + $0x1e8] sm:$0xf0] }
  0x28   : > { %v1659_v49 = vld [vmem:[%s1859_s30 + $0x25c] sm:$0xf0]  ;;  %v1287_v51 = vld [vmem:[%s1859_s30 + $0xe0] sm:$0xf0]  ;;  %886 = vmatpush.bf16.msra.mxu3 %v1514_v40  ;;  %845 = vmatpush.bf16.msra.mxu0 %v1318_v41  ;;  %v1668_v32 = vld [vmem:[%s1859_s30 + $0x2a4] sm:$0xf0]  ;;  %v1426_v38 = vor.u32 %v1640_v30, %v1423_v31 }
  0x29   : > { %v1647_v55 = vld [vmem:[%s1859_s30 + $0x204] sm:$0xf]  ;;  %860 = vmatpush.bf16.msra.mxu1 %v1510_v44  ;;  %871 = vmatpush.bf16.msra.mxu2 %v1322_v45  ;;  %v1478_v58 = vor.u32 %v1659_v49, %v1477_v48  ;;  %v1290_v59 = vor.u32 %v1607_v50, %v1287_v51  ;;  %v1253_v60 = vld [vmem:[%s1859_s30 + $0x80] sm:$0xf]  ;;  %v1357_v33 = vld [vmem:[%s1859_s30 + $0x148] sm:$0xf]  ;;  %v1518_v39 = vor.u32 %v1668_v32, %v1517_v29 }
  0x2a   : > { %v1447_v56 = vld [vmem:[%s1859_s30 + $0x220] sm:$0xf0]  ;;  %v1603_v61 = vld [vmem:[%s1859_s30 + $0x9c] sm:$0xf0]  ;;  %v1628_v34 = vld [vmem:[%s1859_s30 + $0x164] sm:$0xf0] }
  0x2b   : > { %v1445_v62 = vld [vmem:[%s1859_s30 + $0x200] sm:$0xf]  ;;  %v1599_v0 = vld [vmem:[%s1859_s30 + $0x84] sm:$0xf]  ;;  %v1450_v5 = vor.u32 %v1647_v55, %v1447_v56  ;;  %v1254_v6 = vor.u32 %v1603_v61, %v1253_v60  ;;  %v1358_v40 = vor.u32 %v1628_v34, %v1357_v33  ;;  %v1485_v41 = vld [vmem:[%s1859_s30 + $0x248] sm:$0xf] }
  0x2c   : > { %v1651_v63 = vld [vmem:[%s1859_s30 + $0x21c] sm:$0xf0]  ;;  %v1255_v1 = vld [vmem:[%s1859_s30 + $0xa0] sm:$0xf0]  ;;  %887 = vmatpush.bf16.msra.mxu3 %v1482_v53  ;;  %846 = vmatpush.bf16.msra.mxu0 %v1286_v54  ;;  %v1632_v42 = vld [vmem:[%s1859_s30 + $0x18c] sm:$0xf] }
  0x2d   : > { %861 = vmatpush.bf16.msra.mxu1 %v1478_v58  ;;  %872 = vmatpush.bf16.msra.mxu2 %v1290_v59  ;;  %v1446_v7 = vor.u32 %v1651_v63, %v1445_v62  ;;  %v1258_v8 = vor.u32 %v1599_v0, %v1255_v1  ;;  %v1221_v9 = vld [vmem:[%s1859_s30 + $0x40] sm:$0xf]  ;;  %v1591_v11 = vld [vmem:[%s1859_s30 + $0x44] sm:$0xf]  ;;  %v1391_v43 = vld [vmem:[%s1859_s30 + $0x1a8] sm:$0xf0] }
  0x2e   : > { %v1595_v10 = vld [vmem:[%s1859_s30 + $0x5c] sm:$0xf0]  ;;  %v1223_v13 = vld [vmem:[%s1859_s30 + $0x60] sm:$0xf0]  ;;  %v1660_v44 = vld [vmem:[%s1859_s30 + $0x264] sm:$0xf0]  ;;  %v1394_v51 = vor.u32 %v1632_v42, %v1391_v43 }
  0x2f   : > { %v1222_v19 = vor.u32 %v1595_v10, %v1221_v9  ;;  %v1189_v20 = vld [vmem:[%s1859_s30] sm:$0xf]  ;;  %v1226_v23 = vor.u32 %v1591_v11, %v1223_v13  ;;  %v1583_v25 = vld [vmem:[%s1859_s30 + $0x4] sm:$0xf]  ;;  %v1325_v45 = vld [vmem:[%s1859_s30 + $0x108] sm:$0xf]  ;;  %v1486_v53 = vor.u32 %v1660_v44, %v1485_v41 }
  0x30   : > { %888 = vmatpush.bf16.msra.mxu3 %v1450_v5  ;;  %847 = vmatpush.bf16.msra.mxu0 %v1254_v6  ;;  %v1587_v24 = vld [vmem:[%s1859_s30 + $0x1c] sm:$0xf0]  ;;  %v1191_v26 = vld [vmem:[%s1859_s30 + $0x20] sm:$0xf0]  ;;  %v1620_v46 = vld [vmem:[%s1859_s30 + $0x124] sm:$0xf0] }
  0x31   : > { %862 = vmatpush.bf16.msra.mxu1 %v1446_v7  ;;  %873 = vmatpush.bf16.msra.mxu2 %v1258_v8  ;;  %v1190_v35 = vor.u32 %v1587_v24, %v1189_v20  ;;  %v1194_v37 = vor.u32 %v1583_v25, %v1191_v26  ;;  %v828_v47 = vsel %vm817_vm0, %v713_v36, 0  ;;  %v1672_v48 = vld [vmem:[%s1859_s30 + $0x2cc] sm:$0xf]  ;;  %v1945_v50 = vld [vmem:[#allocation1] sm:$0xff]  ;;  %v1453_v52 = vld [vmem:[%s1859_s30 + $0x208] sm:$0xf]  ;;  %v1326_v54 = vor.u32 %v1620_v46, %v1325_v45 }
  0x32   : > { %v1551_v49 = vld [vmem:[%s1859_s30 + $0x2e8] sm:$0xf0]  ;;  %v1652_v55 = vld [vmem:[%s1859_s30 + $0x224] sm:$0xf0]  ;;  %v1429_v63 = vld [vmem:[%s1859_s30 + $0x1d0] sm:$0xf] }
  0x33   : > { %1572 = vmatmul.msk.bf16.vlgmr.msra.gmra.mxu3 %vm814_vm1, %v1920_v21  ;;  %v1624_v56 = vld [vmem:[%s1859_s30 + $0x14c] sm:$0xf]  ;;  %v1554_v58 = vor.u32 %v1672_v48, %v1551_v49  ;;  %v1293_v59 = vld [vmem:[%s1859_s30 + $0xc8] sm:$0xf]  ;;  %v1645_v0 = vld [vmem:[%s1859_s30 + $0x1ec] sm:$0xf0]  ;;  %v1454_v2 = vor.u32 %v1652_v55, %v1453_v52 }
  0x34   : > { %910 = vmatpush.bf16.msrb.mxu3 %v825_v16  ;;  %848 = vmatpush.bf16.msra.mxu0 %v1222_v19  ;;  %v1612_v60 = vld [vmem:[%s1859_s30 + $0xe4] sm:$0xf0]  ;;  %v1664_v61 = vld [vmem:[%s1859_s30 + $0x28c] sm:$0xf]  ;;  %v1362_v1 = vor.u32 %v1624_v56, %v1359_v57  ;;  %v1430_v7 = vor.u32 %v1645_v0, %v1429_v63  ;;  %v1637_v13 = vld [vmem:[%s1859_s30 + $0x1ac] sm:$0xf0] }
  0x35   : > { %894 = vmatpush.bf16.msrb.mxu1 %v1422_v12  ;;  %874 = vmatpush.bf16.msra.mxu2 %v1226_v23  ;;  %v1519_v62 = vld [vmem:[%s1859_s30 + $0x2a8] sm:$0xf0]  ;;  %v1294_v3 = vor.u32 %v1612_v60, %v1293_v59  ;;  %v1261_v8 = vld [vmem:[%s1859_s30 + $0x88] sm:$0xf]  ;;  %v1397_v12 = vld [vmem:[%s1859_s30 + $0x190] sm:$0xf] }
  0x36   : > { %1571 = vmatmul.msk.bf16.vlgmr.msra.gmra.mxu1 %vm814_vm1, %v1920_v21  ;;  %v1327_v5 = vld [vmem:[%s1859_s30 + $0x128] sm:$0xf0]  ;;  %v1522_v6 = vor.u32 %v1664_v61, %v1519_v62  ;;  %v1604_v9 = vld [vmem:[%s1859_s30 + $0xa4] sm:$0xf0]  ;;  %v1968_v15 = vld [vmem:[%s1859_s30 + $0x310] sm:$0x33]  ;;  %v1398_v20 = vor.u32 %v1637_v13, %v1397_v12 }
  0x37   : > { %v1656_v10 = vld [vmem:[%s1859_s30 + $0x24c] sm:$0xf]  ;;  %v1330_v14 = vor.u32 %v1616_v4, %v1327_v5  ;;  %v1262_v16 = vor.u32 %v1604_v9, %v1261_v8  ;;  %v1229_v22 = vld [vmem:[%s1859_s30 + $0x48] sm:$0xf]  ;;  %v1365_v26 = vld [vmem:[%s1859_s30 + $0x150] sm:$0xf] }
  0x38   : > { %911 = vmatpush.bf16.msrb.mxu3 %v1550_v27  ;;  %849 = vmatpush.bf16.msra.mxu0 %v1190_v35  ;;  %v1487_v11 = vld [vmem:[%s1859_s30 + $0x268] sm:$0xf0]  ;;  %v1596_v23 = vld [vmem:[%s1859_s30 + $0x64] sm:$0xf0]  ;;  %v1629_v27 = vld [vmem:[%s1859_s30 + $0x16c] sm:$0xf0] }
  0x39   : > { %895 = vmatpush.bf16.msrb.mxu1 %v1390_v28  ;;  %875 = vmatpush.bf16.msra.mxu2 %v1194_v37  ;;  %v1608_v17 = vld [vmem:[%s1859_s30 + $0xcc] sm:$0xf]  ;;  %v1490_v19 = vor.u32 %v1656_v10, %v1487_v11  ;;  %v610_v28 = vunpack.c.l.b16 %v1968_v15  ;;  %v1641_v30 = vld [vmem:[%s1859_s30 + $0x1d4] sm:$0xf]  ;;  %v1230_v32 = vor.u32 %v1596_v23, %v1229_v22  ;;  %v1366_v36 = vor.u32 %v1629_v27, %v1365_v26  ;;  %v1197_v37 = vld [vmem:[%s1859_s30 + $0x8] sm:$0xf] }
  0x3a   : > { %v1295_v18 = vld [vmem:[%s1859_s30 + $0xe8] sm:$0xf0]  ;;  %v1431_v31 = vld [vmem:[%s1859_s30 + $0x1f0] sm:$0xf0]  ;;  %v1621_v41 = vld [vmem:[%s1859_s30 + $0x12c] sm:$0xf0] }
  0x3b   : > { %850 = vmatmul.bf16.vlgmr.msra.gmra.mxu0 %v1945_v50  ;;  %v1648_v24 = vld [vmem:[%s1859_s30 + $0x20c] sm:$0xf]  ;;  %v1298_v29 = vor.u32 %v1608_v17, %v1295_v18  ;;  %v714_v42 = vpack.c.b16 %v610_v28, %v610_v28  ;;  %v1633_v44 = vld [vmem:[%s1859_s30 + $0x194] sm:$0xf]  ;;  %v1613_v52 = vld [vmem:[%s1859_s30 + $0xec] sm:$0xf0] }
  0x3c   : > { %920 = vmatpush.bf16.msrb.mxu0 %v1426_v38  ;;  %912 = vmatpush.bf16.msrb.mxu3 %v1518_v39  ;;  %v1455_v25 = vld [vmem:[%s1859_s30 + $0x228] sm:$0xf0]  ;;  %v1588_v38 = vld [vmem:[%s1859_s30 + $0x24] sm:$0xf0]  ;;  %v1434_v39 = vor.u32 %v1641_v30, %v1431_v31  ;;  %v1399_v45 = vld [vmem:[%s1859_s30 + $0x1b0] sm:$0xf0] }
  0x3d   : > { %896 = vmatpush.bf16.msrb.mxu1 %v1358_v40  ;;  %936 = vmatpush.bf16.msrb.mxu2 %v828_v47  ;;  %v1600_v33 = vld [vmem:[%s1859_s30 + $0x8c] sm:$0xf]  ;;  %v1458_v35 = vor.u32 %v1648_v24, %v1455_v25  ;;  %v1333_v40 = vld [vmem:[%s1859_s30 + $0x110] sm:$0xf]  ;;  %v1198_v46 = vor.u32 %v1588_v38, %v1197_v37  ;;  %v1367_v59 = vld [vmem:[%s1859_s30 + $0x170] sm:$0xf0] }
  0x3e   : > { %876 = vmatmul.bf16.vlgmr.msra.gmra.mxu2 %v1945_v50  ;;  %v1263_v34 = vld [vmem:[%s1859_s30 + $0xa8] sm:$0xf0]  ;;  %v1334_v49 = vor.u32 %v1621_v41, %v1333_v40  ;;  %v1557_v55 = vld [vmem:[%s1859_s30 + $0x2d0] sm:$0xf]  ;;  %v1617_v8 = vld [vmem:[%s1859_s30 + $0x114] sm:$0xf] }
  0x3f   : > { %v1266_v43 = vor.u32 %v1600_v33, %v1263_v34  ;;  %v1592_v47 = vld [vmem:[%s1859_s30 + $0x4c] sm:$0xf]  ;;  %v1677_v56 = vld [vmem:[%s1859_s30 + $0x2ec] sm:$0xf0]  ;;  %v1335_v9 = vld [vmem:[%s1859_s30 + $0x130] sm:$0xf0] }
  0x40   : > { %921 = vmatpush.bf16.msrb.mxu0 %v1394_v51  ;;  %913 = vmatpush.bf16.msrb.mxu3 %v1486_v53  ;;  %v1231_v48 = vld [vmem:[%s1859_s30 + $0x68] sm:$0xf0]  ;;  %v1301_v51 = vld [vmem:[%s1859_s30 + $0xd0] sm:$0xf]  ;;  %v831_v53 = vsel %vm817_vm0, %v714_v42, 0  ;;  %v1558_v63 = vor.u32 %v1677_v56, %v1557_v55  ;;  %v1338_v18 = vor.u32 %v1617_v8, %v1335_v9 }
  0x41   : > { %897 = vmatpush.bf16.msrb.mxu1 %v1326_v54  ;;  %937 = vmatpush.bf16.msrb.mxu2 %v1554_v58  ;;  %v1402_v54 = vor.u32 %v1633_v44, %v1399_v45  ;;  %v1234_v57 = vor.u32 %v1592_v47, %v1231_v48  ;;  %v1625_v58 = vld [vmem:[%s1859_s30 + $0x154] sm:$0xf]  ;;  %v1584_v60 = vld [vmem:[%s1859_s30 + $0xc] sm:$0xf]  ;;  %v1302_v62 = vor.u32 %v1613_v52, %v1301_v51  ;;  %v1269_v0 = vld [vmem:[%s1859_s30 + $0x90] sm:$0xf] }
  0x42   : > { %v1199_v61 = vld [vmem:[%s1859_s30 + $0x28] sm:$0xf0]  ;;  %v1605_v4 = vld [vmem:[%s1859_s30 + $0xac] sm:$0xf0]  ;;  %v1407_v17 = vld [vmem:[%s1859_s30 + $0x1b8] sm:$0xf0] }
  0x43   : > { %v1525_v5 = vld [vmem:[%s1859_s30 + $0x290] sm:$0xf]  ;;  %v1270_v11 = vor.u32 %v1605_v4, %v1269_v0  ;;  %v1609_v23 = vld [vmem:[%s1859_s30 + $0xd4] sm:$0xf]  ;;  %v1375_v30 = vld [vmem:[%s1859_s30 + $0x178] sm:$0xf0] }
  0x44   : > { %922 = vmatpush.bf16.msrb.mxu0 %v1362_v1  ;;  %914 = vmatpush.bf16.msrb.mxu3 %v1454_v2  ;;  %v1642_v1 = vld [vmem:[%s1859_s30 + $0x1dc] sm:$0xf]  ;;  %v1237_v13 = vld [vmem:[%s1859_s30 + $0x50] sm:$0xf]  ;;  %v1303_v24 = vld [vmem:[%s1859_s30 + $0xf0] sm:$0xf0] }
  0x45   : > { %898 = vmatpush.bf16.msrb.mxu1 %v1294_v3  ;;  %938 = vmatpush.bf16.msrb.mxu2 %v1522_v6  ;;  %v1439_v2 = vld [vmem:[%s1859_s30 + $0x1f8] sm:$0xf0]  ;;  %v1370_v3 = vor.u32 %v1625_v58, %v1367_v59  ;;  %v1669_v6 = vld [vmem:[%s1859_s30 + $0x2ac] sm:$0xf0]  ;;  %v1306_v31 = vor.u32 %v1609_v23, %v1303_v24  ;;  %v1437_v37 = vld [vmem:[%s1859_s30 + $0x1d8] sm:$0xf] }
  0x46   : > { %v1442_v10 = vor.u32 %v1642_v1, %v1439_v2  ;;  %v1526_v12 = vor.u32 %v1669_v6, %v1525_v5  ;;  %v1661_v22 = vld [vmem:[%s1859_s30 + $0x26c] sm:$0xf0]  ;;  %v1646_v38 = vld [vmem:[%s1859_s30 + $0x1f4] sm:$0xf0]  ;;  %v1593_v45 = vld [vmem:[%s1859_s30 + $0x54] sm:$0xf] }
  0x47   : > { %1573 = vmatmul.msk.bf16.vlgmr.msrb.gmra.mxu3 %vm814_vm1, %v1920_v21  ;;  %v1205_v27 = vld [vmem:[%s1859_s30 + $0x10] sm:$0xf]  ;;  %v1343_v47 = vld [vmem:[%s1859_s30 + $0x138] sm:$0xf0]  ;;  %v1438_v48 = vor.u32 %v1646_v38, %v1437_v37  ;;  %v1673_v51 = vld [vmem:[%s1859_s30 + $0x2d4] sm:$0xf] }
  0x48   : > { %946 = vmatpush.bf16.msra.mxu3 %v1430_v7  ;;  %923 = vmatpush.bf16.msrb.mxu0 %v1330_v14  ;;  %v1202_v7 = vor.u32 %v1584_v60, %v1199_v61  ;;  %v611_v14 = vunpack.c.h.b16 %v1968_v15  ;;  %v1461_v33 = vld [vmem:[%s1859_s30 + $0x210] sm:$0xf]  ;;  %v1559_v52 = vld [vmem:[%s1859_s30 + $0x2f0] sm:$0xf0]  ;;  %v1610_v60 = vld [vmem:[%s1859_s30 + $0xdc] sm:$0xf] }
  0x49   : > { %899 = vmatpush.bf16.msrb.mxu1 %v1262_v16  ;;  %939 = vmatpush.bf16.msrb.mxu2 %v1490_v19  ;;  %v1634_v16 = vld [vmem:[%s1859_s30 + $0x19c] sm:$0xf]  ;;  %v1597_v19 = vld [vmem:[%s1859_s30 + $0x6c] sm:$0xf0]  ;;  %v1562_v58 = vor.u32 %v1673_v51, %v1559_v52  ;;  %v1585_v59 = vld [vmem:[%s1859_s30 + $0x14] sm:$0xf] }
  0x4a   : > { %v1410_v25 = vor.u32 %v1634_v16, %v1407_v17  ;;  %v1238_v15 = vor.u32 %v1597_v19, %v1237_v13  ;;  %v715_v28 = vpack.c.b16 %v611_v14, %v611_v14  ;;  %v1653_v34 = vld [vmem:[%s1859_s30 + $0x22c] sm:$0xf0]  ;;  %v1311_v61 = vld [vmem:[%s1859_s30 + $0xf8] sm:$0xf0]  ;;  %v1665_v0 = vld [vmem:[%s1859_s30 + $0x294] sm:$0xf] }
  0x4b   : > { %v1462_v41 = vor.u32 %v1653_v34, %v1461_v33  ;;  %v1527_v1 = vld [vmem:[%s1859_s30 + $0x2b0] sm:$0xf0]  ;;  %v1373_v2 = vld [vmem:[%s1859_s30 + $0x158] sm:$0xf]  ;;  %v1314_v5 = vor.u32 %v1610_v60, %v1311_v61  ;;  %v1602_v9 = vld [vmem:[%s1859_s30 + $0x9c] sm:$0xf] }
  0x4c   : > { %947 = vmatpush.bf16.msra.mxu3 %v1398_v20  ;;  %924 = vmatpush.bf16.msrb.mxu0 %v1298_v29  ;;  %v1493_v20 = vld [vmem:[%s1859_s30 + $0x250] sm:$0xf]  ;;  %v1626_v29 = vld [vmem:[%s1859_s30 + $0x15c] sm:$0xf]  ;;  %v834_v42 = vsel %vm817_vm0, %v715_v28, 0 }
  0x4d   : > { %900 = vmatpush.bf16.msrb.mxu1 %v1230_v32  ;;  %940 = vmatpush.bf16.msrb.mxu2 %v1458_v35  ;;  %v1494_v26 = vor.u32 %v1661_v22, %v1493_v20  ;;  %v1589_v32 = vld [vmem:[%s1859_s30 + $0x2c] sm:$0xf0]  ;;  %v1601_v35 = vld [vmem:[%s1859_s30 + $0x94] sm:$0xf]  ;;  %v1341_v13 = vld [vmem:[%s1859_s30 + $0x118] sm:$0xf] }
  0x4e   : > { %v1206_v40 = vor.u32 %v1589_v32, %v1205_v27  ;;  %v1657_v8 = vld [vmem:[%s1859_s30 + $0x254] sm:$0xf]  ;;  %v1622_v14 = vld [vmem:[%s1859_s30 + $0x134] sm:$0xf0]  ;;  %v1567_v19 = vld [vmem:[%s1859_s30 + $0x2f8] sm:$0xf0] }
  0x4f   : > { %v1594_v23 = vld [vmem:[%s1859_s30 + $0x5c] sm:$0xf]  ;;  %v1463_v27 = vld [vmem:[%s1859_s30 + $0x230] sm:$0xf0]  ;;  %v1598_v52 = vld [vmem:[%s1859_s30 + $0x74] sm:$0xf0] }
  0x50   : > { %948 = vmatpush.bf16.msra.mxu3 %v1366_v36  ;;  %925 = vmatpush.bf16.msrb.mxu0 %v1266_v43  ;;  %v1271_v36 = vld [vmem:[%s1859_s30 + $0xb0] sm:$0xf0]  ;;  %v2035_v43 = vld [vmem:[%s1859_s30 + $0x318] sm:$0x33] }
  0x51   : > { %972 = vmatpush.bf16.msra.mxu2 %v1434_v39  ;;  %901 = vmatpush.bf16.msrb.mxu1 %v1198_v46  ;;  %v1378_v39 = vor.u32 %v1626_v29, %v1375_v30  ;;  %v1274_v44 = vor.u32 %v1601_v35, %v1271_v36  ;;  %v1618_v46 = vld [vmem:[%s1859_s30 + $0x11c] sm:$0xf]  ;;  %v613_v55 = vunpack.c.h.b16 %v2035_v43  ;;  %v612_v16 = vunpack.c.l.b16 %v2035_v43  ;;  %v1309_v29 = vld [vmem:[%s1859_s30 + $0xd8] sm:$0xf] }
  0x52   : > { %1574 = vmatmul.msk.bf16.vlgmr.msrb.gmra.mxu2 %vm814_vm1, %v1920_v21  ;;  %v1346_v56 = vor.u32 %v1618_v46, %v1343_v47  ;;  %v1247_v24 = vld [vmem:[%s1859_s30 + $0x78] sm:$0xf0]  ;;  %v1614_v30 = vld [vmem:[%s1859_s30 + $0xf4] sm:$0xf0] }
  0x53   : > { %v717_v4 = vpack.c.b16 %v613_v55, %v613_v55  ;;  %v716_v28 = vpack.c.b16 %v612_v16, %v612_v16  ;;  %v1535_v32 = vld [vmem:[%s1859_s30 + $0x2b8] sm:$0xf0]  ;;  %v1250_v33 = vor.u32 %v1594_v23, %v1247_v24  ;;  %v1310_v37 = vor.u32 %v1614_v30, %v1309_v29  ;;  %v1678_v43 = vld [vmem:[%s1859_s30 + $0x2f4] sm:$0xf0] }
  0x54   : > { %949 = vmatpush.bf16.msra.mxu3 %v1334_v49  ;;  %926 = vmatpush.bf16.msrb.mxu0 %v1234_v57  ;;  %v1239_v49 = vld [vmem:[%s1859_s30 + $0x70] sm:$0xf0]  ;;  %v1586_v35 = vld [vmem:[%s1859_s30 + $0x1c] sm:$0xf]  ;;  %v1213_v60 = vld [vmem:[%s1859_s30 + $0x18] sm:$0xf] }
  0x55   : > { %962 = vmatpush.bf16.msra.mxu1 %v831_v53  ;;  %973 = vmatpush.bf16.msra.mxu2 %v1402_v54  ;;  %v1405_v53 = vld [vmem:[%s1859_s30 + $0x198] sm:$0xf]  ;;  %v1242_v57 = vor.u32 %v1593_v45, %v1239_v49  ;;  %v840_v17 = vsel %vm817_vm0, %v717_v4, 0  ;;  %v1215_v36 = vld [vmem:[%s1859_s30 + $0x38] sm:$0xf0]  ;;  %v837_v38 = vsel %vm817_vm0, %v716_v28, 0 }
  0x56   : > { %902 = vmatmul.bf16.vlgmr.msrb.gmra.mxu1 %v1945_v50  ;;  %v1638_v54 = vld [vmem:[%s1859_s30 + $0x1b4] sm:$0xf0]  ;;  %v1503_v45 = vld [vmem:[%s1859_s30 + $0x278] sm:$0xf0]  ;;  %v1218_v46 = vor.u32 %v1586_v35, %v1215_v36 }
  0x57   : > { %v1245_v49 = vld [vmem:[%s1859_s30 + $0x58] sm:$0xf]  ;;  %v1650_v55 = vld [vmem:[%s1859_s30 + $0x21c] sm:$0xf] }
  0x58   : > { %950 = vmatpush.bf16.msra.mxu3 %v1302_v62  ;;  %927 = vmatpush.bf16.msrb.mxu0 %v1202_v7  ;;  %v1406_v62 = vor.u32 %v1638_v54, %v1405_v53  ;;  %v1530_v7 = vor.u32 %v1665_v0, %v1527_v1  ;;  %v1533_v53 = vld [vmem:[%s1859_s30 + $0x298] sm:$0xf] }
  0x59   : > { %963 = vmatpush.bf16.msra.mxu1 %v1558_v63  ;;  %974 = vmatpush.bf16.msra.mxu2 %v1370_v3  ;;  %v1207_v63 = vld [vmem:[%s1859_s30 + $0x30] sm:$0xf0]  ;;  %v1630_v3 = vld [vmem:[%s1859_s30 + $0x174] sm:$0xf0] }
  0x5a   : > { %v1210_v6 = vor.u32 %v1585_v59, %v1207_v63  ;;  %v1670_v54 = vld [vmem:[%s1859_s30 + $0x2b4] sm:$0xf0] }
  0x5b   : > { %928 = vmatmul.bf16.vlgmr.msrb.gmra.mxu0 %v1945_v50  ;;  %v1590_v61 = vld [vmem:[%s1859_s30 + $0x34] sm:$0xf0] }
  0x5c   : > { %1024 = vmatpush.bf16.msra.mxu0 %v1442_v10  ;;  %951 = vmatpush.bf16.msra.mxu3 %v1270_v11  ;;  %v1279_v10 = vld [vmem:[%s1859_s30 + $0xb8] sm:$0xf0]  ;;  %v1374_v11 = vor.u32 %v1630_v3, %v1373_v2  ;;  %v1662_v63 = vld [vmem:[%s1859_s30 + $0x274] sm:$0xf0]  ;;  %v1214_v0 = vor.u32 %v1590_v61, %v1213_v60 }
  0x5d   : > { %964 = vmatpush.bf16.msra.mxu1 %v1526_v12  ;;  %975 = vmatpush.bf16.msra.mxu2 %v1338_v18  ;;  %v1495_v12 = vld [vmem:[%s1859_s30 + $0x270] sm:$0xf0]  ;;  %v1674_v18 = vld [vmem:[%s1859_s30 + $0x2dc] sm:$0xf]  ;;  %v1282_v20 = vor.u32 %v1602_v9, %v1279_v10  ;;  %v1469_v2 = vld [vmem:[%s1859_s30 + $0x218] sm:$0xf] }
  0x5e   : > { %v1498_v22 = vor.u32 %v1657_v8, %v1495_v12  ;;  %v1654_v3 = vld [vmem:[%s1859_s30 + $0x234] sm:$0xf0] }
  0x5f   : > { %v1470_v4 = vor.u32 %v1654_v3, %v1469_v2 }
  0x60   : > { %1025 = vmatpush.bf16.msra.mxu0 %v1410_v25  ;;  %952 = vmatpush.bf16.msra.mxu3 %v1238_v15  ;;  %v1342_v25 = vor.u32 %v1622_v14, %v1341_v13  ;;  %v1570_v15 = vor.u32 %v1674_v18, %v1567_v19 }
  0x61   : > { %965 = vmatpush.bf16.msra.mxu1 %v1494_v26  ;;  %976 = vmatpush.bf16.msra.mxu2 %v1306_v31  ;;  %v1649_v26 = vld [vmem:[%s1859_s30 + $0x214] sm:$0xf]  ;;  %v1666_v31 = vld [vmem:[%s1859_s30 + $0x29c] sm:$0xf] }
  0x62   : > { %v1466_v34 = vor.u32 %v1649_v26, %v1463_v27 }
  0x64   : > { %1026 = vmatpush.bf16.msra.mxu0 %v1378_v39  ;;  %953 = vmatpush.bf16.msra.mxu3 %v1206_v40  ;;  %v1277_v39 = vld [vmem:[%s1859_s30 + $0x98] sm:$0xf]  ;;  %v1538_v40 = vor.u32 %v1666_v31, %v1535_v32 }
  0x65   : > { %966 = vmatpush.bf16.msra.mxu1 %v1462_v41  ;;  %977 = vmatpush.bf16.msra.mxu2 %v1274_v44  ;;  %v1606_v41 = vld [vmem:[%s1859_s30 + $0xb4] sm:$0xf0]  ;;  %v1658_v44 = vld [vmem:[%s1859_s30 + $0x25c] sm:$0xf] }
  0x66   : > { %v1278_v47 = vor.u32 %v1606_v41, %v1277_v39  ;;  %v1506_v51 = vor.u32 %v1658_v44, %v1503_v45 }
  0x67   : > { %954 = vmatmul.bf16.vlgmr.msra.gmra.mxu3 %v1945_v50 }
  0x68   : > { %988 = vmatpush.bf16.msrb.mxu3 %v834_v42  ;;  %1575 = vmatmul.msk.bf16.vlgmr.msra.gmra.mxu1 %vm814_vm1, %v1920_v21  ;;  %v1565_v42 = vld [vmem:[%s1859_s30 + $0x2d8] sm:$0xf] }
  0x69   : > { %998 = vmatpush.bf16.msrb.mxu1 %v1438_v48  ;;  %1027 = vmatpush.bf16.msra.mxu0 %v1346_v56  ;;  %v1566_v48 = vor.u32 %v1678_v43, %v1565_v42  ;;  %v1471_v56 = vld [vmem:[%s1859_s30 + $0x238] sm:$0xf0] }
  0x6a   : > { %978 = vmatpush.bf16.msra.mxu2 %v1242_v57  ;;  %v1246_v57 = vor.u32 %v1598_v52, %v1245_v49  ;;  %v1474_v59 = vor.u32 %v1650_v55, %v1471_v56 }
  0x6c   : > { %989 = vmatpush.bf16.msrb.mxu3 %v1562_v58  ;;  %v1534_v58 = vor.u32 %v1670_v54, %v1533_v53 }
  0x6d   : > { %999 = vmatpush.bf16.msrb.mxu1 %v1406_v62  ;;  %1028 = vmatpush.bf16.msra.mxu0 %v1314_v5  ;;  %v1501_v62 = vld [vmem:[%s1859_s30 + $0x258] sm:$0xf]  ;;  %s1739_s30 = scalar_lea.hbm %s2163_s3, 32 }
  0x6e   : > { %979 = vmatpush.bf16.msra.mxu2 %v1210_v6  ;;  %v1502_v1 = vor.u32 %v1662_v63, %v1501_v62  ;;  %v2113_v6 = vld [vmem:[%s186_s8] sm:$0xff]  ;;  %p1741_p2 = scmp.lt.s32.totalorder %s1739_s30, %s1735_s27 }
  0x6f   : > { %v295_v24 = vperm.slane %v2113_v6, 2  ;;  %v296_v28 = vperm.slane %v2113_v6, 3  ;;  %v298_v54 = vperm.slane %v2113_v6, 5  ;;  %v297_v55 = vperm.slane %v2113_v6, 4 }
  0x70   : > { %990 = vmatpush.bf16.msrb.mxu3 %v1530_v7  ;;  %v293_v7 = vperm.slane %v2113_v6, 0  ;;  %p1742_p3 = por %p1741_p2, %p1740_p1 }
  0x71   : > { %1000 = vmatpush.bf16.msrb.mxu1 %v1374_v11  ;;  %980 = vmatmul.bf16.vlgmr.msra.gmra.mxu2 %v1945_v50  ;;  %v294_v11 = vperm.slane %v2113_v6, 1 }
  0x72   : > { %1040 = vmatpush.bf16.msrb.mxu2 %v840_v17  ;;  %1029 = vmatpush.bf16.msra.mxu0 %v1282_v20  ;;  %p1743_p4 = pnand %p1742_p3, %p1738_p0 }
  0x74   : > { %991 = vmatpush.bf16.msrb.mxu3 %v1498_v22 }
  0x75   : > { %1001 = vmatpush.bf16.msrb.mxu1 %v1342_v25 }
  0x76   : > { %1041 = vmatpush.bf16.msrb.mxu2 %v1570_v15  ;;  %1030 = vmatpush.bf16.msra.mxu0 %v1250_v33 }
  0x78   : > { %992 = vmatpush.bf16.msrb.mxu3 %v1466_v34 }
  0x79   : > { %1002 = vmatpush.bf16.msrb.mxu1 %v1310_v37 }
  0x7a   : > { %1042 = vmatpush.bf16.msrb.mxu2 %v1538_v40  ;;  %1031 = vmatpush.bf16.msra.mxu0 %v1218_v46 }
  0x7b   : > { %1576 = vmatmul.msk.bf16.vlgmr.msrb.gmra.mxu3 %vm814_vm1, %v1920_v21 }
  0x7c   : > { %1014 = vmatpush.bf16.msra.mxu3 %v837_v38 }
  0x7d   : > { %1003 = vmatpush.bf16.msrb.mxu1 %v1278_v47  ;;  %1032 = vmatmul.bf16.vlgmr.msra.gmra.mxu0 %v1945_v50 }
  0x7e   : > { %1043 = vmatpush.bf16.msrb.mxu2 %v1506_v51 }
  0x80   : > { %1015 = vmatpush.bf16.msra.mxu3 %v1566_v48 }
  0x81   : > { %1004 = vmatpush.bf16.msrb.mxu1 %v1246_v57 }
  0x82   : > { %1044 = vmatpush.bf16.msrb.mxu2 %v1474_v59  ;;  %v300_v59 = vperm.slane %v2113_v6, 7 }
  0x84   : > { %1016 = vmatpush.bf16.msra.mxu3 %v1534_v58 }
  0x85   : > { %1578 = vmatmul.msk.bf16.vlgmr.msrb.gmra.mxu2 %vm814_vm1, %v1920_v21  ;;  %1005 = vmatpush.bf16.msrb.mxu1 %v1214_v0  ;;  %v299_v0 = vperm.slane %v2113_v6, 6 }
  0x88   : > { %1017 = vmatpush.bf16.msra.mxu3 %v1502_v1  ;;  %1006 = vmatmul.bf16.vlgmr.msrb.gmra.mxu1 %v1945_v50 }
  0x8c   : > { %1018 = vmatpush.bf16.msra.mxu3 %v1470_v4 }
  0x8f   : > { %1577 = vmatmul.msk.bf16.vlgmr.msra.gmra.mxu3 %vm814_vm1, %v1920_v21 }
  0xb3   : > { %v864_v5 = vpop.f32.mrf.mxu1 }
  0xb6   : > { %v890_v50 = vpop.f32.mrf.mxu3 }
  0xb8   : > { %v851_v8 = vpop.f32.mrf.mxu0 }
  0xb9   : > { %v852_v9 = vadd.f32 %v851_v8, %v293_v7 }
  0xbb   : > { %v866_v10 = vpop.f32.mrf.mxu1  ;;  %v865_v21 = vadd.f32 %v864_v5, %v852_v9 }
  0xbd   : > { %v1050_v18 = vmax.f32 %v865_v21, 0.0 }
  0xbe   : > { %v892_v12 = vpop.f32.mrf.mxu3 }
  0xc0   : > { %v853_v16 = vpop.f32.mrf.mxu0 }
  0xc1   : > { %v877_v13 = vpop.f32.mrf.mxu2 }
  0xc2   : > { %v878_v14 = vadd.f32 %v877_v13, %v294_v11 }
  0xc4   : > { %v891_v17 = vadd.f32 %v890_v50, %v878_v14 }
  0xc6   : > { %v1051_v19 = vmax.f32 %v891_v17, 0.0 }
  0xc8   : > { %v1058_v20 = vpack.c.bf16 %v1051_v19, %v1050_v18 }
  0xc9   : > { %v879_v22 = vpop.f32.mrf.mxu2 }
  0xca   : > { %v916_v23 = vpop.f32.mrf.mxu3  ;;  %v1066_v37 = vrot.slane %v1058_v20, 3 }
  0xcc   : > { %v1076_v43 = vsel %vm1073_vm2, %v1058_v20, %v1066_v37 }
  0xd2   : > { %v918_v15 = vpop.f32.mrf.mxu3 }
  0xd3   : > { %v903_v25 = vpop.f32.mrf.mxu1 }
  0xd4   : > { %v904_v27 = vadd.f32 %v903_v25, %v295_v24 }
  0xd5   : > { %v942_v26 = vpop.f32.mrf.mxu2 }
  0xd6   : > { %v917_v30 = vadd.f32 %v916_v23, %v904_v27 }
  0xd8   : > { %v929_v29 = vpop.f32.mrf.mxu0  ;;  %v1052_v35 = vmax.f32 %v917_v30, 0.0 }
  0xd9   : > { %v930_v31 = vadd.f32 %v929_v29, %v296_v28 }
  0xdb   : > { %v905_v32 = vpop.f32.mrf.mxu1  ;;  %v943_v33 = vadd.f32 %v942_v26, %v930_v31 }
  0xdd   : > { %v944_v34 = vpop.f32.mrf.mxu2  ;;  %v1053_v36 = vmax.f32 %v943_v33, 0.0 }
  0xdf   : > { %v1059_v38 = vpack.c.bf16 %v1053_v36, %v1052_v35 }
  0xe0   : > { %v931_v39 = vpop.f32.mrf.mxu0 }
  0xe1   : > { %v1067_v40 = vrot.slane %v1059_v38, 6  ;;  %v1068_v41 = vrot.slane %v1059_v38, 1 }
  0xe3   : > { %v1080_v44 = vsel %vm1077_vm3, %v1067_v40, %v1068_v41 }
  0xe4   : > { %v1081_v45 = vsel %vm817_vm0, %v1076_v43, %v1080_v44 }
  0xe5   : > { %v968_v42 = vpop.f32.mrf.mxu1 }
  0xea   : > { %v955_v46 = vpop.f32.mrf.mxu3 }
  0xeb   : > { %v956_v61 = vadd.f32 %v955_v46, %v297_v55 }
  0xed   : > { %v970_v47 = vpop.f32.mrf.mxu1  ;;  %v969_v2 = vadd.f32 %v968_v42, %v956_v61 }
  0xef   : > { %v1054_v50 = vmax.f32 %v969_v2, 0.0 }
  0xf2   : > { %v957_v48 = vpop.f32.mrf.mxu3 }
  0xf4   : > { %v981_v49 = vpop.f32.mrf.mxu2 }
  0xf5   : > { %v982_v57 = vadd.f32 %v981_v49, %v298_v54 }
  0xfa   : > { %v1033_v51 = vpop.f32.mrf.mxu0 }
  0xfb   : > { %v1034_v1 = vadd.f32 %v1033_v51, %v300_v59 }
  0xfc   : > { %v983_v53 = vpop.f32.mrf.mxu2 }
  0xfe   : > { %v994_v52 = vpop.f32.mrf.mxu3 }
  0xff   : > { %v995_v63 = vadd.f32 %v994_v52, %v982_v57 }
 0x101   : > { %v1055_v3 = vmax.f32 %v995_v63, 0.0 }
 0x102   : > { %v1035_v56 = vpop.f32.mrf.mxu0 }
 0x103   : > { %v1060_v10 = vpack.c.bf16 %v1055_v3, %v1054_v50 }
 0x105   : > { %v1007_v58 = vpop.f32.mrf.mxu1  ;;  %v1069_v6 = vrot.slane %v1060_v10, 4  ;;  %v1070_v13 = vrot.slane %v1060_v10, 7 }
 0x106   : > { %v996_v60 = vpop.f32.mrf.mxu3  ;;  %v1008_v4 = vadd.f32 %v1007_v58, %v299_v0 }
 0x107   : > { %v1085_v19 = vsel %vm1082_vm4, %v1069_v6, %v1070_v13 }
 0x108   : > { %v1046_v62 = vpop.f32.mrf.mxu2 }
 0x109   : > { %v1047_v5 = vadd.f32 %v1046_v62, %v1034_v1 }
 0x10b   : > { %v1057_v21 = vmax.f32 %v1047_v5, 0.0 }
 0x10d   : > { %v1009_v7 = vpop.f32.mrf.mxu1 }
 0x110   : > { %v1048_v9 = vpop.f32.mrf.mxu2 }
 0x112   : > { %v1020_v8 = vpop.f32.mrf.mxu3 }
 0x113   : > { %v1021_v11 = vadd.f32 %v1020_v8, %v1008_v4 }
 0x115   : > { %v1056_v12 = vmax.f32 %v1021_v11, 0.0 }
 0x117   : > { %v1061_v14 = vpack.c.bf16 %v1057_v21, %v1056_v12 }
 0x119   : > { %v1071_v16 = vrot.slane %v1061_v14, 2  ;;  %v1072_v17 = vrot.slane %v1061_v14, 5 }
 0x11a   : > { %v1022_v18 = vpop.f32.mrf.mxu3 }
 0x11b   : > { %v1089_v20 = vsel %vm1086_vm5, %v1071_v16, %v1072_v17 }
 0x11c   : > { %v1091_v22 = vsel %vm1090_vm6, %v1085_v19, %v1089_v20 }
 0x11d   : > { %v1093_v23 = vsel %vm1092_vm7, %v1081_v45, %v1091_v22 }
 0x11e   : > { %1095 = vst [vmem:[%s177_s19] sm:$0xff] %v1093_v23 }
 0x11f   : > { %1746 = shalt.err (!%p1743_p4)
}
 0x120   : > { %1680 = dma.vmem_to_hbm [thread:$0]  (%p1841_p5), %s1110_s20, 128, %s1112_s24, %s1097_s25  }
 0x121 PF: > { %p1686_p7 = scmp.ge.s32.totalorder %s1781_s15, 2  ;;  %s1123_s6 = sand.u32 1, %s1769_s12  }
 0x122   : > { %s1124_s7 = scalar_lea.sflag [#allocation3], %s1123_s6 }
 0x123   : > { %p1683_p8 = pnand %p1686_p7, %p1845_p6 }
 0x125   : > { %p1684_p9 = pneg %p1683_p8 }
 0x127   : > { %1764 = dma.done.wait (%p1684_p9), %s1124_s7, 128  }
 0x128   : > { %1766 = vsyncadd (%p1684_p9), %s1124_s7, 4294967168  ;;  %p13_p10 = scmp.ge.s32.totalorder %s1828_s18, 6   ;;  %s2166_s12 = smov %s1773_s13 }
 0x129   : > { %s2167_s13 = smov %s1777_s14  ;;  %s2168_s14 = smov %s1839_s21 }
 0x12a   : > { %s2169_s15 = smov %s1828_s18  ;;  %15 = sbr.rel (!%p13_p10) target bundleno = 3 (0x3), region = 70 }
 0x12f   :  { %1130 = vsyncpa [#allocation3], 1 }
 0x130   :  { %1132 = vsyncpa [#allocation3 + $0x1], 1 }

</bundles_post_ra>
